<compile_context>
chip_gen: v5e
topology: v5e:2x2
jax: 0.10.0
libtpu: 0.0.40
codegen_flags: <defaults>
</compile_context>

<pallas_src>
import jax
import jax.numpy as jnp
from jax import lax
from jax.experimental import pallas as pl
from jax.experimental.pallas import tpu as pltpu


def _ceil8(x):
    return -(-x // 8) * 8


# ----------------------------------------------------------------------------
# Weight pre-packing (done ONCE, outside the forward path)
# ----------------------------------------------------------------------------
def _pack_taps(w, c_out_pad, c_in_pad, dtype):
    """PyTorch Conv1d weight (C_out, C_in, 3) -> tap-major (3*c_out_pad, c_in_pad).

    Tap k occupies rows [k*c_out_pad, (k+1)*c_out_pad); both channel dims are
    zero-padded to multiples of 8 so every kernel slice is 8-sublane aligned."""
    c_out, c_in, k = w.shape
    wt = jnp.transpose(w, (2, 0, 1))                       # (3, C_out, C_in)
    wt = jnp.pad(wt, ((0, 0), (0, c_out_pad - c_out), (0, c_in_pad - c_in)))
    return wt.reshape(k * c_out_pad, c_in_pad).astype(dtype)


def prepare_params(params, dtype=jnp.bfloat16):
    """Pack conv weights (bf16 MXU operands by default, f32 optional) and f32
    biases, with all channel dims padded to multiples of 8."""
    hid, c_in, _ = params["w1"].shape
    n_primal = params["w4"].shape[0]
    hid_p, cin_p, out_p = _ceil8(hid), _ceil8(c_in), _ceil8(n_primal)

    def pad_bias(b, rows):
        b2 = b.reshape(-1, 1).astype(jnp.float32)
        return jnp.pad(b2, ((0, rows - b2.shape[0]), (0, 0)))

    return {
        "w1": _pack_taps(params["w1"], hid_p, cin_p, dtype),
        "w2": _pack_taps(params["w2"], hid_p, hid_p, dtype),
        "w3": _pack_taps(params["w3"], hid_p, hid_p, dtype),
        "w4": _pack_taps(params["w4"], out_p, hid_p, dtype),
        "b1": pad_bias(params["b1"], hid_p),
        "b2": pad_bias(params["b2"], hid_p),
        "b3": pad_bias(params["b3"], hid_p),
        "b4": pad_bias(params["b4"], out_p),
        "alphas": params["alphas"].astype(jnp.float32),
    }


# ----------------------------------------------------------------------------
# Kernel
# ----------------------------------------------------------------------------
def _make_kernel(n_chunks, cw, hid_p, cin_p, out_p):
    def kernel(x_ref, mask_ref, w1_ref, b1_ref, w2_ref, b2_ref,
               w3_ref, b3_ref, w4_ref, b4_ref, alpha_ref, out_ref):
        cdtype = w1_ref.dtype                      # MXU operand dtype (bf16/f32)

        # Hoisted loop-invariants: masks, weights, biases, PReLU alphas.
        mask = mask_ref[...]                       # (2, cw) f32 0/1
        m_prev, m_next = mask[0:1, :], mask[1:2, :]
        w1, w2, w3, w4 = w1_ref[...], w2_ref[...], w3_ref[...], w4_ref[...]
        b1, b2, b3, b4 = b1_ref[...], b2_ref[...], b3_ref[...], b4_ref[...]
        a1, a2, a3 = alpha_ref[0], alpha_ref[1], alpha_ref[2]

        def conv3(x, w, c_out_p, b):
            # x: (C_in, cw) f32.  w: (3*c_out_p, C_in) cdtype, tap-major rows.
            # Conv1d(k=3, pad=1): y[:,l] = W0 x[:,l-1] + W1 x[:,l] + W2 x[:,l+1] + b.
            # Rolls/masks are applied to the INPUT and the three tap dots
            # accumulate into a single (c_out_p, cw) f32 accumulator.
            xm = (pltpu.roll(x, shift=1, axis=1) * m_prev).astype(cdtype)       # x[l-1]
            xc = x.astype(cdtype)                                               # x[l]
            xp = (pltpu.roll(x, shift=cw - 1, axis=1) * m_next).astype(cdtype)  # x[l+1]
            z = jnp.dot(w[0 * c_out_p:1 * c_out_p], xm,
                        preferred_element_type=jnp.float32)
            z = z + jnp.dot(w[1 * c_out_p:2 * c_out_p], xc,
                            preferred_element_type=jnp.float32)
            z = z + jnp.dot(w[2 * c_out_p:3 * c_out_p], xp,
                            preferred_element_type=jnp.float32)
            return z + b

        def prelu(y, a):                           # f32 elementwise
            return jnp.where(y > 0, y, a * y)

        def chunk_body(c, carry):
            x = x_ref[c].astype(jnp.float32)       # (cin_p, cw) f32
            h = prelu(conv3(x, w1, hid_p, b1), a1)
            h = prelu(conv3(h, w2, hid_p, b2), a2)
            h = prelu(conv3(h, w3, hid_p, b3), a3)
            y = conv3(h, w4, out_p, b4)            # (out_p, cw) f32
            # Residual in f32; rows >= n_primal are garbage and sliced off
            # by the wrapper.
            y = y + x[:out_p]
            out_ref[c] = y.astype(out_ref.dtype)
            return carry

        if n_chunks == 1:
            chunk_body(0, 0)
        else:
            lax.fori_loop(0, n_chunks, chunk_body, 0, unroll=n_chunks <= 8)

    return kernel


# ----------------------------------------------------------------------------
# Tiling / hardware heuristics
# ----------------------------------------------------------------------------
def _hw_defaults():
    """(target_lanes, min_grid_steps, vmem_limit_bytes), generation-aware."""
    try:
        cap = pltpu.get_tpu_info().vmem_capacity_bytes
    except Exception:
        cap = 64 * 1024 * 1024
    if cap >= 100 * 1024 * 1024:
        # v5e / v6e: 128 MiB VMEM, 1 TensorCore -> few, wide grid steps.
        return 32768, 1, 64 * 1024 * 1024
    # v7x-like: 64 MiB VMEM, 2 TensorCores -> keep several steps, cap VMEM.
    return 16384, 4, min(cap // 2, 32 * 1024 * 1024)


def _tile_plan(n, seg_len, target_lanes, chunk_target, min_steps):
    """tb = batch elements folded per grid step (divides n); k = segments per
    in-kernel chunk (divides tb).  Chunks start at segment boundaries, so the
    conv never needs a halo across chunks."""
    divs = [d for d in range(1, n + 1) if n % d == 0]
    cands = [d for d in divs if n // d >= min_steps] or divs
    fit = [d for d in cands if d * seg_len <= target_lanes] or [min(cands)]
    tb = max(fit)
    kdivs = [k for k in range(1, tb + 1) if tb % k == 0]
    kfit = [k for k in kdivs if k * seg_len <= chunk_target] or [1]
    return tb, max(kfit)


# ----------------------------------------------------------------------------
# Wrapper
# ----------------------------------------------------------------------------
def primal_net_forward(f, op_adj_hs, packed, *, target_lanes=None,
                       chunk_target=512, min_steps=None, vmem_limit=None):
    """f: (N, n_primal, L).  op_adj_hs: list of (N, c_i, L).  packed: output of
    prepare_params.  Returns (N, n_primal, L) in f.dtype (f32 residual)."""
    N, n_primal, L = f.shape
    c_in = n_primal + sum(a.shape[1] for a in op_adj_hs)
    cin_p = packed["w1"].shape[1]
    hid_p = packed["b1"].shape[0]
    out_p = packed["b4"].shape[0]
    assert cin_p == _ceil8(c_in), "packed w1 does not match f/OpAdj channel count"
    assert out_p >= n_primal

    tl_d, ms_d, vl_d = _hw_defaults()
    target_lanes = tl_d if target_lanes is None else target_lanes
    min_steps = ms_d if min_steps is None else min_steps
    vmem_limit = vl_d if vmem_limit is None else vmem_limit

    tb, k = _tile_plan(N, L, target_lanes, chunk_target, min_steps)
    cw = k * L                         # in-kernel chunk width (lanes)
    n_chunks = tb // k                 # chunks per grid step
    grid_steps = N // tb
    total_chunks = grid_steps * n_chunks

    # Channel concat + batch->lane folding + chunking in ONE layout rewrite:
    # (N, c_in, L) -> (total_chunks, cin_p, cw), f32.
    x = jnp.concatenate([f] + list(op_adj_hs), axis=1).astype(jnp.float32)
    x = jnp.pad(x, ((0, 0), (0, cin_p - c_in), (0, 0)))
    x3d = (jnp.transpose(x, (1, 0, 2))
           .reshape(cin_p, total_chunks, cw).transpose(1, 0, 2))

    # Per-segment conv boundary masks; the pattern repeats every seg_len and
    # cw is a multiple of seg_len, so one (2, cw) mask serves every chunk.
    lpos = jnp.arange(cw, dtype=jnp.int32) % L
    mask = jnp.stack([lpos != 0, lpos != L - 1]).astype(jnp.float32)

    def _const(arr):                   # all constant inputs are 2-D
        return pl.BlockSpec(arr.shape, lambda b: (0, 0))

    kernel = _make_kernel(n_chunks, cw, hid_p, cin_p, out_p)

    out3d = pl.pallas_call(
        kernel,
        out_shape=jax.ShapeDtypeStruct((total_chunks, out_p, cw), f.dtype),
        grid=(grid_steps,),
        in_specs=[
            pl.BlockSpec((n_chunks, cin_p, cw), lambda b: (b, 0, 0)),
            _const(mask),
            _const(packed["w1"]), _const(packed["b1"]),
            _const(packed["w2"]), _const(packed["b2"]),
            _const(packed["w3"]), _const(packed["b3"]),
            _const(packed["w4"]), _const(packed["b4"]),
            pl.BlockSpec(memory_space=pltpu.MemorySpace.SMEM),   # PReLU alphas
        ],
        out_specs=pl.BlockSpec((n_chunks, out_p, cw), lambda b: (b, 0, 0)),
        compiler_params=pltpu.CompilerParams(
            dimension_semantics=("parallel",),
            vmem_limit_bytes=vmem_limit),
    )(x3d, mask, packed["w1"], packed["b1"], packed["w2"], packed["b2"],
      packed["w3"], packed["b3"], packed["w4"], packed["b4"], packed["alphas"])

    # Unfold: (total_chunks, out_p, cw) -> (N, n_primal, L), drop padded rows.
    out2d = jnp.transpose(out3d, (1, 0, 2)).reshape(out_p, N * L)
    return jnp.transpose(out2d[:n_primal].reshape(n_primal, N, L), (1, 0, 2))


# ----------------------------------------------------------------------------
# Pure-JAX reference (PyTorch Conv1d(k=3, pad=1) + PReLU semantics)
# ----------------------------------------------------------------------------
def _conv1d_ref(x, w, b):
    L = x.shape[-1]
    xp = jnp.pad(x, ((0, 0), (0, 0), (1, 1)))
    y = jnp.zeros((x.shape[0], w.shape[0], L), jnp.float32)
    for k in range(3):
        y = y + jnp.einsum("oi,nil->nol", w[:, :, k], xp[:, :, k:k + L])
    return y + b[None, :, None]


def _primal_net_ref(f, op_adj_hs, p):
    x = jnp.concatenate([f] + list(op_adj_hs), axis=1)
    a = p["alphas"]
    h = _conv1d_ref(x, p["w1"], p["b1"]); h = jnp.where(h > 0, h, a[0] * h)
    h = _conv1d_ref(h, p["w2"], p["b2"]); h = jnp.where(h > 0, h, a[1] * h)
    h = _conv1d_ref(h, p["w3"], p["b3"]); h = jnp.where(h > 0, h, a[2] * h)
    h = _conv1d_ref(h, p["w4"], p["b4"])
    return f + h


if __name__ == "__main__":
    # Shapes consistent with PrimalNet(n_primal=5, n_OpAdj_hs=1, 'baseline'):
    #   f: (N, 5, L), OpAdj_hs: [(N, 1, L)] -> layer-1 input channels = 6
    N, n_primal, n_opadj, L = 4, 5, 1, 128
    c_in, hid = n_primal + n_opadj, 32

    key = jax.random.PRNGKey(0)
    ks = jax.random.split(key, 10)
    f = jax.random.normal(ks[0], (N, n_primal, L), jnp.float32)
    op_adj_hs = [jax.random.normal(ks[1], (N, n_opadj, L), jnp.float32)]

    params = {
        "w1": 0.1 * jax.random.normal(ks[2], (hid, c_in, 3), jnp.float32),
        "b1": 0.1 * jax.random.normal(ks[3], (hid,), jnp.float32),
        "w2": 0.1 * jax.random.normal(ks[4], (hid, hid, 3), jnp.float32),
        "b2": 0.1 * jax.random.normal(ks[5], (hid,), jnp.float32),
        "w3": 0.1 * jax.random.normal(ks[6], (hid, hid, 3), jnp.float32),
        "b3": 0.1 * jax.random.normal(ks[7], (hid,), jnp.float32),
        "w4": 0.1 * jax.random.normal(ks[8], (n_primal, hid, 3), jnp.float32),
        "b4": 0.1 * jax.random.normal(ks[9], (n_primal,), jnp.float32),
        "alphas": jnp.full((3,), 0.25, jnp.float32),  # PReLU default init
    }
    ref = _primal_net_ref(f, op_adj_hs, params)

    # f32 MXU-operand path: tight numerical check of the fused layout.
    out32 = primal_net_forward(f, op_adj_hs, prepare_params(params, jnp.float32))
    out32 = jax.block_until_ready(out32)
    assert out32.shape == (N, n_primal, L)
    assert jnp.allclose(out32, ref, atol=1e-4, rtol=1e-4), "f32 mismatch vs reference"

    # Default bf16 MXU-operand path (f32 accumulation, f32 residual, f32 output).
    out16 = primal_net_forward(f, op_adj_hs, prepare_params(params))
    out16 = jax.block_until_ready(out16)
    assert out16.shape == (N, n_primal, L)
    assert jnp.allclose(out16, ref, atol=5e-2, rtol=5e-2), "bf16 mismatch vs reference"

    print("KERNEL_OK")
</pallas_src>

<mosaic_0001>
module attributes {stable_mosaic.version = 11 : i64} {
  func.func @kernel(%arg0: i32, %arg1: memref<1x8x128xf32, #tpu.memory_space<vmem>>, %arg2: memref<2x128xf32, #tpu.memory_space<vmem>>, %arg3: memref<96x8xf32, #tpu.memory_space<vmem>>, %arg4: memref<32x1xf32, #tpu.memory_space<vmem>>, %arg5: memref<96x32xf32, #tpu.memory_space<vmem>>, %arg6: memref<32x1xf32, #tpu.memory_space<vmem>>, %arg7: memref<96x32xf32, #tpu.memory_space<vmem>>, %arg8: memref<32x1xf32, #tpu.memory_space<vmem>>, %arg9: memref<24x32xf32, #tpu.memory_space<vmem>>, %arg10: memref<8x1xf32, #tpu.memory_space<vmem>>, %arg11: memref<3xf32, #tpu.memory_space<smem>>, %arg12: memref<1x8x128xf32, #tpu.memory_space<vmem>>) attributes {dimension_semantics = [#tpu.dimension_semantics<parallel>], iteration_bounds = array<i64: 4>, scalar_prefetch = 0 : i64, scratch_operands = 0 : i64, tpu.core_type = #tpu.core_type<tc>, window_params = [{transform_indices = @transform_0, window_bounds = array<i64: 1, 8, 128>}, {pipeline_mode = #tpu.pipeline_mode<synchronous>, transform_indices = @transform_1, window_bounds = array<i64: 2, 128>}, {pipeline_mode = #tpu.pipeline_mode<synchronous>, transform_indices = @transform_2, window_bounds = array<i64: 96, 8>}, {pipeline_mode = #tpu.pipeline_mode<synchronous>, transform_indices = @transform_3, window_bounds = array<i64: 32, 1>}, {pipeline_mode = #tpu.pipeline_mode<synchronous>, transform_indices = @transform_4, window_bounds = array<i64: 96, 32>}, {pipeline_mode = #tpu.pipeline_mode<synchronous>, transform_indices = @transform_5, window_bounds = array<i64: 32, 1>}, {pipeline_mode = #tpu.pipeline_mode<synchronous>, transform_indices = @transform_6, window_bounds = array<i64: 96, 32>}, {pipeline_mode = #tpu.pipeline_mode<synchronous>, transform_indices = @transform_7, window_bounds = array<i64: 32, 1>}, {pipeline_mode = #tpu.pipeline_mode<synchronous>, transform_indices = @transform_8, window_bounds = array<i64: 24, 32>}, {pipeline_mode = #tpu.pipeline_mode<synchronous>, transform_indices = @transform_9, window_bounds = array<i64: 8, 1>}, {transform_indices = @transform_10, window_bounds = array<i64: 3>}, {transform_indices = @transform_11, window_bounds = array<i64: 1, 8, 128>}]} {
    %c0 = arith.constant 0 : index
    %c0_0 = arith.constant 0 : index
    %0 = vector.load %arg2[%c0, %c0_0] : memref<2x128xf32, #tpu.memory_space<vmem>>, vector<2x128xf32>
    %1 = vector.extract_strided_slice %0 {offsets = [0, 0], sizes = [1, 128], strides = [1, 1]} : vector<2x128xf32> to vector<1x128xf32>
    %2 = vector.extract_strided_slice %0 {offsets = [1, 0], sizes = [1, 128], strides = [1, 1]} : vector<2x128xf32> to vector<1x128xf32>
    %c0_1 = arith.constant 0 : index
    %c0_2 = arith.constant 0 : index
    %3 = vector.load %arg3[%c0_1, %c0_2] : memref<96x8xf32, #tpu.memory_space<vmem>>, vector<96x8xf32>
    %c0_3 = arith.constant 0 : index
    %c0_4 = arith.constant 0 : index
    %4 = vector.load %arg5[%c0_3, %c0_4] : memref<96x32xf32, #tpu.memory_space<vmem>>, vector<96x32xf32>
    %c0_5 = arith.constant 0 : index
    %c0_6 = arith.constant 0 : index
    %5 = vector.load %arg7[%c0_5, %c0_6] : memref<96x32xf32, #tpu.memory_space<vmem>>, vector<96x32xf32>
    %c0_7 = arith.constant 0 : index
    %c0_8 = arith.constant 0 : index
    %6 = vector.load %arg9[%c0_7, %c0_8] : memref<24x32xf32, #tpu.memory_space<vmem>>, vector<24x32xf32>
    %c0_9 = arith.constant 0 : index
    %c0_10 = arith.constant 0 : index
    %7 = vector.load %arg4[%c0_9, %c0_10] : memref<32x1xf32, #tpu.memory_space<vmem>>, vector<32x1xf32>
    %c0_11 = arith.constant 0 : index
    %c0_12 = arith.constant 0 : index
    %8 = vector.load %arg6[%c0_11, %c0_12] : memref<32x1xf32, #tpu.memory_space<vmem>>, vector<32x1xf32>
    %c0_13 = arith.constant 0 : index
    %c0_14 = arith.constant 0 : index
    %9 = vector.load %arg8[%c0_13, %c0_14] : memref<32x1xf32, #tpu.memory_space<vmem>>, vector<32x1xf32>
    %c0_15 = arith.constant 0 : index
    %c0_16 = arith.constant 0 : index
    %10 = vector.load %arg10[%c0_15, %c0_16] : memref<8x1xf32, #tpu.memory_space<vmem>>, vector<8x1xf32>
    %c0_17 = arith.constant 0 : index
    %11 = memref.load %arg11[%c0_17] : memref<3xf32, #tpu.memory_space<smem>>
    %c1 = arith.constant 1 : index
    %12 = memref.load %arg11[%c1] : memref<3xf32, #tpu.memory_space<smem>>
    %c2 = arith.constant 2 : index
    %13 = memref.load %arg11[%c2] : memref<3xf32, #tpu.memory_space<smem>>
    %c0_18 = arith.constant 0 : index
    %c0_19 = arith.constant 0 : index
    %c0_20 = arith.constant 0 : index
    %14 = vector.load %arg1[%c0_18, %c0_19, %c0_20] : memref<1x8x128xf32, #tpu.memory_space<vmem>>, vector<1x8x128xf32>
    %15 = vector.shape_cast %14 : vector<1x8x128xf32> to vector<8x128xf32>
    %c1_i32 = arith.constant 1 : i32
    %16 = tpu.dynamic_rotate %15 by %c1_i32 dim 1 : vector<8x128xf32>, i32 -> vector<8x128xf32>
    %17 = vector.broadcast %1 : vector<1x128xf32> to vector<8x128xf32>
    %18 = arith.mulf %16, %17 : vector<8x128xf32>
    %c127_i32 = arith.constant 127 : i32
    %19 = tpu.dynamic_rotate %15 by %c127_i32 dim 1 : vector<8x128xf32>, i32 -> vector<8x128xf32>
    %20 = vector.broadcast %2 : vector<1x128xf32> to vector<8x128xf32>
    %21 = arith.mulf %19, %20 : vector<8x128xf32>
    %22 = vector.extract_strided_slice %3 {offsets = [0, 0], sizes = [32, 8], strides = [1, 1]} : vector<96x8xf32> to vector<32x8xf32>
    %cst = arith.constant dense<0.000000e+00> : vector<32x128xf32>
    %23 = tpu.matmul %22, %18, %cst {dimension_numbers = #tpu.dot_dimension_numbers<[1], [0], [0], [1], [0, 0, 1, 1], [], []>} : vector<32x8xf32>, vector<8x128xf32>, vector<32x128xf32> -> vector<32x128xf32>
    %24 = vector.extract_strided_slice %3 {offsets = [32, 0], sizes = [32, 8], strides = [1, 1]} : vector<96x8xf32> to vector<32x8xf32>
    %cst_21 = arith.constant dense<0.000000e+00> : vector<32x128xf32>
    %25 = tpu.matmul %24, %15, %cst_21 {dimension_numbers = #tpu.dot_dimension_numbers<[1], [0], [0], [1], [0, 0, 1, 1], [], []>} : vector<32x8xf32>, vector<8x128xf32>, vector<32x128xf32> -> vector<32x128xf32>
    %26 = arith.addf %23, %25 : vector<32x128xf32>
    %27 = vector.extract_strided_slice %3 {offsets = [64, 0], sizes = [32, 8], strides = [1, 1]} : vector<96x8xf32> to vector<32x8xf32>
    %cst_22 = arith.constant dense<0.000000e+00> : vector<32x128xf32>
    %28 = tpu.matmul %27, %21, %cst_22 {dimension_numbers = #tpu.dot_dimension_numbers<[1], [0], [0], [1], [0, 0, 1, 1], [], []>} : vector<32x8xf32>, vector<8x128xf32>, vector<32x128xf32> -> vector<32x128xf32>
    %29 = arith.addf %26, %28 : vector<32x128xf32>
    %30 = vector.broadcast %7 : vector<32x1xf32> to vector<32x128xf32>
    %31 = arith.addf %29, %30 : vector<32x128xf32>
    %cst_23 = arith.constant 0.000000e+00 : f32
    %32 = vector.broadcast %cst_23 : f32 to vector<32x128xf32>
    %33 = arith.cmpf ogt, %31, %32 : vector<32x128xf32>
    %34 = vector.broadcast %11 : f32 to vector<32x128xf32>
    %35 = arith.mulf %34, %31 : vector<32x128xf32>
    %36 = arith.select %33, %31, %35 : vector<32x128xi1>, vector<32x128xf32>
    %c1_i32_24 = arith.constant 1 : i32
    %37 = tpu.dynamic_rotate %36 by %c1_i32_24 dim 1 : vector<32x128xf32>, i32 -> vector<32x128xf32>
    %38 = vector.broadcast %1 : vector<1x128xf32> to vector<32x128xf32>
    %39 = arith.mulf %37, %38 : vector<32x128xf32>
    %c127_i32_25 = arith.constant 127 : i32
    %40 = tpu.dynamic_rotate %36 by %c127_i32_25 dim 1 : vector<32x128xf32>, i32 -> vector<32x128xf32>
    %41 = vector.broadcast %2 : vector<1x128xf32> to vector<32x128xf32>
    %42 = arith.mulf %40, %41 : vector<32x128xf32>
    %43 = vector.extract_strided_slice %4 {offsets = [0, 0], sizes = [32, 32], strides = [1, 1]} : vector<96x32xf32> to vector<32x32xf32>
    %cst_26 = arith.constant dense<0.000000e+00> : vector<32x128xf32>
    %44 = tpu.matmul %43, %39, %cst_26 {dimension_numbers = #tpu.dot_dimension_numbers<[1], [0], [0], [1], [0, 0, 1, 1], [], []>} : vector<32x32xf32>, vector<32x128xf32>, vector<32x128xf32> -> vector<32x128xf32>
    %45 = vector.extract_strided_slice %4 {offsets = [32, 0], sizes = [32, 32], strides = [1, 1]} : vector<96x32xf32> to vector<32x32xf32>
    %cst_27 = arith.constant dense<0.000000e+00> : vector<32x128xf32>
    %46 = tpu.matmul %45, %36, %cst_27 {dimension_numbers = #tpu.dot_dimension_numbers<[1], [0], [0], [1], [0, 0, 1, 1], [], []>} : vector<32x32xf32>, vector<32x128xf32>, vector<32x128xf32> -> vector<32x128xf32>
    %47 = arith.addf %44, %46 : vector<32x128xf32>
    %48 = vector.extract_strided_slice %4 {offsets = [64, 0], sizes = [32, 32], strides = [1, 1]} : vector<96x32xf32> to vector<32x32xf32>
    %cst_28 = arith.constant dense<0.000000e+00> : vector<32x128xf32>
    %49 = tpu.matmul %48, %42, %cst_28 {dimension_numbers = #tpu.dot_dimension_numbers<[1], [0], [0], [1], [0, 0, 1, 1], [], []>} : vector<32x32xf32>, vector<32x128xf32>, vector<32x128xf32> -> vector<32x128xf32>
    %50 = arith.addf %47, %49 : vector<32x128xf32>
    %51 = vector.broadcast %8 : vector<32x1xf32> to vector<32x128xf32>
    %52 = arith.addf %50, %51 : vector<32x128xf32>
    %cst_29 = arith.constant 0.000000e+00 : f32
    %53 = vector.broadcast %cst_29 : f32 to vector<32x128xf32>
    %54 = arith.cmpf ogt, %52, %53 : vector<32x128xf32>
    %55 = vector.broadcast %12 : f32 to vector<32x128xf32>
    %56 = arith.mulf %55, %52 : vector<32x128xf32>
    %57 = arith.select %54, %52, %56 : vector<32x128xi1>, vector<32x128xf32>
    %c1_i32_30 = arith.constant 1 : i32
    %58 = tpu.dynamic_rotate %57 by %c1_i32_30 dim 1 : vector<32x128xf32>, i32 -> vector<32x128xf32>
    %59 = vector.broadcast %1 : vector<1x128xf32> to vector<32x128xf32>
    %60 = arith.mulf %58, %59 : vector<32x128xf32>
    %c127_i32_31 = arith.constant 127 : i32
    %61 = tpu.dynamic_rotate %57 by %c127_i32_31 dim 1 : vector<32x128xf32>, i32 -> vector<32x128xf32>
    %62 = vector.broadcast %2 : vector<1x128xf32> to vector<32x128xf32>
    %63 = arith.mulf %61, %62 : vector<32x128xf32>
    %64 = vector.extract_strided_slice %5 {offsets = [0, 0], sizes = [32, 32], strides = [1, 1]} : vector<96x32xf32> to vector<32x32xf32>
    %cst_32 = arith.constant dense<0.000000e+00> : vector<32x128xf32>
    %65 = tpu.matmul %64, %60, %cst_32 {dimension_numbers = #tpu.dot_dimension_numbers<[1], [0], [0], [1], [0, 0, 1, 1], [], []>} : vector<32x32xf32>, vector<32x128xf32>, vector<32x128xf32> -> vector<32x128xf32>
    %66 = vector.extract_strided_slice %5 {offsets = [32, 0], sizes = [32, 32], strides = [1, 1]} : vector<96x32xf32> to vector<32x32xf32>
    %cst_33 = arith.constant dense<0.000000e+00> : vector<32x128xf32>
    %67 = tpu.matmul %66, %57, %cst_33 {dimension_numbers = #tpu.dot_dimension_numbers<[1], [0], [0], [1], [0, 0, 1, 1], [], []>} : vector<32x32xf32>, vector<32x128xf32>, vector<32x128xf32> -> vector<32x128xf32>
    %68 = arith.addf %65, %67 : vector<32x128xf32>
    %69 = vector.extract_strided_slice %5 {offsets = [64, 0], sizes = [32, 32], strides = [1, 1]} : vector<96x32xf32> to vector<32x32xf32>
    %cst_34 = arith.constant dense<0.000000e+00> : vector<32x128xf32>
    %70 = tpu.matmul %69, %63, %cst_34 {dimension_numbers = #tpu.dot_dimension_numbers<[1], [0], [0], [1], [0, 0, 1, 1], [], []>} : vector<32x32xf32>, vector<32x128xf32>, vector<32x128xf32> -> vector<32x128xf32>
    %71 = arith.addf %68, %70 : vector<32x128xf32>
    %72 = vector.broadcast %9 : vector<32x1xf32> to vector<32x128xf32>
    %73 = arith.addf %71, %72 : vector<32x128xf32>
    %cst_35 = arith.constant 0.000000e+00 : f32
    %74 = vector.broadcast %cst_35 : f32 to vector<32x128xf32>
    %75 = arith.cmpf ogt, %73, %74 : vector<32x128xf32>
    %76 = vector.broadcast %13 : f32 to vector<32x128xf32>
    %77 = arith.mulf %76, %73 : vector<32x128xf32>
    %78 = arith.select %75, %73, %77 : vector<32x128xi1>, vector<32x128xf32>
    %c1_i32_36 = arith.constant 1 : i32
    %79 = tpu.dynamic_rotate %78 by %c1_i32_36 dim 1 : vector<32x128xf32>, i32 -> vector<32x128xf32>
    %80 = vector.broadcast %1 : vector<1x128xf32> to vector<32x128xf32>
    %81 = arith.mulf %79, %80 : vector<32x128xf32>
    %c127_i32_37 = arith.constant 127 : i32
    %82 = tpu.dynamic_rotate %78 by %c127_i32_37 dim 1 : vector<32x128xf32>, i32 -> vector<32x128xf32>
    %83 = vector.broadcast %2 : vector<1x128xf32> to vector<32x128xf32>
    %84 = arith.mulf %82, %83 : vector<32x128xf32>
    %85 = vector.extract_strided_slice %6 {offsets = [0, 0], sizes = [8, 32], strides = [1, 1]} : vector<24x32xf32> to vector<8x32xf32>
    %cst_38 = arith.constant dense<0.000000e+00> : vector<8x128xf32>
    %86 = tpu.matmul %85, %81, %cst_38 {dimension_numbers = #tpu.dot_dimension_numbers<[1], [0], [0], [1], [0, 0, 1, 1], [], []>} : vector<8x32xf32>, vector<32x128xf32>, vector<8x128xf32> -> vector<8x128xf32>
    %87 = vector.extract_strided_slice %6 {offsets = [8, 0], sizes = [8, 32], strides = [1, 1]} : vector<24x32xf32> to vector<8x32xf32>
    %cst_39 = arith.constant dense<0.000000e+00> : vector<8x128xf32>
    %88 = tpu.matmul %87, %78, %cst_39 {dimension_numbers = #tpu.dot_dimension_numbers<[1], [0], [0], [1], [0, 0, 1, 1], [], []>} : vector<8x32xf32>, vector<32x128xf32>, vector<8x128xf32> -> vector<8x128xf32>
    %89 = arith.addf %86, %88 : vector<8x128xf32>
    %90 = vector.extract_strided_slice %6 {offsets = [16, 0], sizes = [8, 32], strides = [1, 1]} : vector<24x32xf32> to vector<8x32xf32>
    %cst_40 = arith.constant dense<0.000000e+00> : vector<8x128xf32>
    %91 = tpu.matmul %90, %84, %cst_40 {dimension_numbers = #tpu.dot_dimension_numbers<[1], [0], [0], [1], [0, 0, 1, 1], [], []>} : vector<8x32xf32>, vector<32x128xf32>, vector<8x128xf32> -> vector<8x128xf32>
    %92 = arith.addf %89, %91 : vector<8x128xf32>
    %93 = vector.broadcast %10 : vector<8x1xf32> to vector<8x128xf32>
    %94 = arith.addf %92, %93 : vector<8x128xf32>
    %95 = arith.addf %94, %15 : vector<8x128xf32>
    %c0_41 = arith.constant 0 : index
    %c0_42 = arith.constant 0 : index
    %c0_43 = arith.constant 0 : index
    %96 = vector.load %arg12[%c0_41, %c0_42, %c0_43] : memref<1x8x128xf32, #tpu.memory_space<vmem>>, vector<1x8x128xf32>
    %97 = vector.shape_cast %96 : vector<1x8x128xf32> to vector<8x128xf32>
    %98 = vector.shape_cast %95 : vector<8x128xf32> to vector<1x8x128xf32>
    tpu.vector_store %arg12[%c0_41, %c0_42, %c0_43], %98 {strides = array<i32>} : memref<1x8x128xf32, #tpu.memory_space<vmem>>, vector<1x8x128xf32>,
    return
  }
  func.func @transform_0(%arg0: i32) -> (i32, i32, i32) {
    %c0_i32 = arith.constant 0 : i32
    %c0_i32_0 = arith.constant 0 : i32
    %c0_i32_1 = arith.constant 0 : i32
    return %arg0, %c0_i32, %c0_i32_0 : i32, i32, i32
  }
  func.func @transform_1(%arg0: i32) -> (i32, i32) {
    %c0_i32 = arith.constant 0 : i32
    %c0_i32_0 = arith.constant 0 : i32
    %c0_i32_1 = arith.constant 0 : i32
    return %c0_i32, %c0_i32_0 : i32, i32
  }
  func.func @transform_2(%arg0: i32) -> (i32, i32) {
    %c0_i32 = arith.constant 0 : i32
    %c0_i32_0 = arith.constant 0 : i32
    %c0_i32_1 = arith.constant 0 : i32
    return %c0_i32, %c0_i32_0 : i32, i32
  }
  func.func @transform_3(%arg0: i32) -> (i32, i32) {
    %c0_i32 = arith.constant 0 : i32
    %c0_i32_0 = arith.constant 0 : i32
    %c0_i32_1 = arith.constant 0 : i32
    return %c0_i32, %c0_i32_0 : i32, i32
  }
  func.func @transform_4(%arg0: i32) -> (i32, i32) {
    %c0_i32 = arith.constant 0 : i32
    %c0_i32_0 = arith.constant 0 : i32
    %c0_i32_1 = arith.constant 0 : i32
    return %c0_i32, %c0_i32_0 : i32, i32
  }
  func.func @transform_5(%arg0: i32) -> (i32, i32) {
    %c0_i32 = arith.constant 0 : i32
    %c0_i32_0 = arith.constant 0 : i32
    %c0_i32_1 = arith.constant 0 : i32
    return %c0_i32, %c0_i32_0 : i32, i32
  }
  func.func @transform_6(%arg0: i32) -> (i32, i32) {
    %c0_i32 = arith.constant 0 : i32
    %c0_i32_0 = arith.constant 0 : i32
    %c0_i32_1 = arith.constant 0 : i32
    return %c0_i32, %c0_i32_0 : i32, i32
  }
  func.func @transform_7(%arg0: i32) -> (i32, i32) {
    %c0_i32 = arith.constant 0 : i32
    %c0_i32_0 = arith.constant 0 : i32
    %c0_i32_1 = arith.constant 0 : i32
    return %c0_i32, %c0_i32_0 : i32, i32
  }
  func.func @transform_8(%arg0: i32) -> (i32, i32) {
    %c0_i32 = arith.constant 0 : i32
    %c0_i32_0 = arith.constant 0 : i32
    %c0_i32_1 = arith.constant 0 : i32
    return %c0_i32, %c0_i32_0 : i32, i32
  }
  func.func @transform_9(%arg0: i32) -> (i32, i32) {
    %c0_i32 = arith.constant 0 : i32
    %c0_i32_0 = arith.constant 0 : i32
    %c0_i32_1 = arith.constant 0 : i32
    return %c0_i32, %c0_i32_0 : i32, i32
  }
  func.func @transform_10(%arg0: i32) -> i32 {
    %c0_i32 = arith.constant 0 : i32
    %c0_i32_0 = arith.constant 0 : i32
    return %c0_i32 : i32
  }
  func.func @transform_11(%arg0: i32) -> (i32, i32, i32) {
    %c0_i32 = arith.constant 0 : i32
    %c0_i32_0 = arith.constant 0 : i32
    %c0_i32_1 = arith.constant 0 : i32
    return %arg0, %c0_i32, %c0_i32_0 : i32, i32, i32
  }
}

</mosaic_0001>

<bundles_post_ra>
// kernel: tpu_custom_call.1
= control target key start
LH: loop header
LB: loop body
LE: loop exit
PB: predicated region body
PF: predicated region fallthrough
CT: control target
= control target key end

     0   :  { %s1801_s0 = inlined_call_operand.vmem [shape: f32[4,8,128], index: 0, kind: input, shape index: {}]   ;;  %s1802_s1 = inlined_call_operand.vmem [shape: f32[2,128], index: 1, kind: input, shape index: {}]   ;;  %s1803_s2 = inlined_call_operand.vmem [shape: f32[96,8], index: 2, kind: input, shape index: {}]   ;;  %s1804_s3 = inlined_call_operand.vmem [shape: f32[32,1], index: 3, kind: input, shape index: {}]   ;;  %s1805_s4 = inlined_call_operand.vmem [shape: f32[96,32], index: 4, kind: input, shape index: {}]   ;;  %s1806_s5 = inlined_call_operand.vmem [shape: f32[32,1], index: 5, kind: input, shape index: {}]   ;;  %s1807_s6 = inlined_call_operand.vmem [shape: f32[96,32], index: 6, kind: input, shape index: {}]   ;;  %s1808_s7 = inlined_call_operand.vmem [shape: f32[32,1], index: 7, kind: input, shape index: {}]   ;;  %s1809_s8 = inlined_call_operand.vmem [shape: f32[24,32], index: 8, kind: input, shape index: {}]   ;;  %s1810_s9 = inlined_call_operand.vmem [shape: f32[8,1], index: 9, kind: input, shape index: {}]   ;;  %s1811_s10 = inlined_call_operand.vmem [shape: f32[3], index: 10, kind: input, shape index: {}]   ;;  %s1812_s11 = inlined_call_operand.hbm [shape: f32[4,8,128], index: 11, kind: output, shape index: {}]  }
   0x1   :  { %1813 = sst [smem:[#allocation8_spill]] %s1801_s0 }
   0x2   :  { %16 = vsyncpa [#allocation4], 0 }
   0x3   :  { %17 = vsyncpa [#allocation3], 0 }
   0x4   :  { %19 = vsyncpa [#allocation3 + $0x1], 0  ;;  %s1450_s17 = smov 0   ;;  %s1452_s18 = smov 0  }
   0x5   :  { %s1454_s19 = smov 0   ;;  %s1456_s20 = smov 0  }
   0x6 LB: > { %s1471_s21 = sadd.s32 4294967295, %s1384_s20   ;;  %s1192_s22 = sadd.s32 4294967294, %s1384_s20   ;;  %s1384_s20 = sphi %s1456_s20, %s1820_s20   ;;  %s1380_s19 = sphi %s1454_s19, %s1819_s19   ;;  %s1376_s18 = sphi %s1452_s18, %s1818_s18   ;;  %s1372_s17 = sphi %s1450_s17, %s1817_s17  }
   0x7   : > { %s1475_s23 = sadd.s32 1, %s1384_s20   ;;  %s268_s24 = sadd.s32 1, %s1380_s19 }
   0x8   : > { %s265_s25 = ssub.s32 %s1384_s20, %s1475_s23  ;;  %p278_p0 = scmp.ne.s32.totalorder %s1380_s19, %s1376_s18 }
   0x9   : > { %p266_p1 = scmp.eq.s32.totalorder %s265_s25, 0  ;;  %p279_p2 = scmp.eq.s32.totalorder %s1471_s21, 3 }
   0xa   : > { %p284_p3 = scmp.ne.s32.totalorder %s1376_s18, %s1372_s17  ;;  %p285_p4 = scmp.eq.s32.totalorder %s1192_s22, 3 }
   0xb   : > { %s1486_s26 = scalar_select %p266_p1, %s1380_s19, %s268_s24  }
   0xc   : > { %p1488_p5 = por %p279_p2, %p278_p0  ;;  %p1492_p6 = por %p285_p4, %p284_p3 }
   0xd   : > { %p1193_p7 = scmp.ge.s32.totalorder %s1384_s20, 1  ;;  %p292_p8 = scmp.lt.s32.totalorder %s1384_s20, 5 }
   0xe   : > { %p1261_p9 = scmp.eq.s32.totalorder %s1471_s21, 0  ;;  %s331_s12 = sshll.u32 %s1811_s10, 4  ;;  %s332_s12 = int_to_ptr.vmem [resolvable:$true] %s331_s12 }
   0xf   : > { %p293_p10 = pnand %p1193_p7, %p292_p8  ;;  %s1386_s13 = smov [#allocation2]  }
  0x11   : > { %p1253_p11 = pneg %p293_p10  ;;  %351 = sbr.rel (%p293_p10) target bundleno = 1168 (0x490), region = 64 }
  0x13   : > { %p1254_p12 = pnand %p1261_p9, %p1253_p11 }
  0x15   : > { %1256 = dma.vmem_to_smem (!%p1254_p12), %s332_s12, 16, %s1386_s13, [#allocation4]  }
  0x16   : > { %1363 = dma.done.wait (%p1261_p9), [#allocation4], 16  }
  0x17   : > { %1365 = vsyncadd (%p1261_p9), [#allocation4], 4294967280 }
  0x18   : > { %358 = sfence }
  0x19   : > { %p392_p13 = scmp.lt.s32.totalorder %s1471_s21, 3  ;;  %s1816_s0 = sld [smem:[#allocation8_spill]]  ;;  %v404_v1 = vld [vmem:[%s1803_s2 + $0x38] sm:$0xff]  ;;  %vm461_vm0 = vcmask 64512   ;;  %v403_v2 = vld [vmem:[%s1803_s2 + $0x30] sm:$0xff]  ;;  %v401_v3 = vld [vmem:[%s1803_s2 + $0x20] sm:$0xff] }
  0x1a   : > { %s1387_s25 = smov 127   ;;  %s1388_s29 = smov 1   ;;  %v402_v4 = vld [vmem:[%s1803_s2 + $0x28] sm:$0xff]  ;;  %v1389_v5 = vmov 0   ;;  %v396_v6 = vld [vmem:[%s1802_s1] sm:$0x3] }
  0x1b   : > { %s393_s14 = scalar_select %p392_p13, %s1471_s21, 3  ;;  %1300 = vset.pattern.permute.xlu1 %v1389_v5  ;;  %1301 = vset.pattern.permute.xlu2 %v1389_v5  ;;  %v439_v7 = vld [vmem:[%s1804_s3 + $0x18] sm:$0xff]  ;;  %v1538_v8 = vperm.slane %v396_v6, 1  ;;  %v405_v11 = vld [vmem:[%s1803_s2 + $0x40] sm:$0xff]  ;;  %v438_v12 = vld [vmem:[%s1804_s3 + $0x10] sm:$0xff]  ;;  %v1551_v14 = vperm.slane %v396_v6, 0 }
  0x1c   : > { %1302 = vset.pattern.permute.xlu0 %v1389_v5  ;;  %606 = vperm.xlu1 %1300, %v439_v7   ;;  %v437_v13 = vld [vmem:[%s1804_s3 + $0x8] sm:$0xff]  ;;  %v397_v17 = vld [vmem:[%s1803_s2] sm:$0xff]  ;;  %v407_v21 = vld [vmem:[%s1803_s2 + $0x50] sm:$0xff]  ;;  %s449_s13 = sld [smem:[#allocation2]]  ;;  %vm650_vm5 = vcmask 261120   ;;  %s1242_s16 = sshll.u32 %s1471_s21, 3 }
  0x1d   : > { %s1199_s15 = sshll.u32 %s393_s14, 3  ;;  %596 = vperm.xlu2 %1301, %v437_v13   ;;  %v406_v18 = vld [vmem:[%s1803_s2 + $0x48] sm:$0xff]  ;;  %v436_v19 = vld [vmem:[%s1804_s3] sm:$0xff]  ;;  %v399_v22 = vld [vmem:[%s1803_s2 + $0x10] sm:$0xff]  ;;  %s1200_s14 = sld [smem:[#allocation2 + $0x1]] }
  0x1e   : > { %v398_v20 = vld [vmem:[%s1803_s2 + $0x8] sm:$0xff]  ;;  %v408_v23 = vld [vmem:[%s1803_s2 + $0x58] sm:$0xff]  ;;  %v415_v6 = vld [vmem:[%s1805_s4 + $0x30] sm:$0xff]  ;;  %s1116_s30 = scalar_lea.hbm %s1812_s11, %s1242_s16 }
  0x1f   : > { %s395_s24 = scalar_lea.vmem %s1816_s0, %s1199_s15  ;;  %v400_v24 = vld [vmem:[%s1803_s2 + $0x18] sm:$0xff]  ;;  %v441_v63 = vld [vmem:[%s1806_s5 + $0x8] sm:$0xff]  ;;  %s1201_s15 = sld [smem:[#allocation2 + $0x2]] }
  0x20   : > { %v1507_v0 = vld [vmem:[%s395_s24] sm:$0xff]  ;;  %v443_v62 = vld [vmem:[%s1806_s5 + $0x18] sm:$0xff]  ;;  %v414_v5 = vld [vmem:[%s1805_s4 + $0x28] sm:$0xff]  ;;  %s1120_s12 = sshll.u32 %s1116_s30, 4  ;;  %s1121_s12 = int_to_ptr.hbm [resolvable:$true] %s1120_s12 }
  0x21   : > { %457 = vrot.lane.b32.xlu0 %v1507_v0, %s1387_s25  ;;  %1246 = vmatpush.msra.mxu2 %v1507_v0 }
  0x22   : > { %1245 = vmatpush.msra.mxu1 %v1507_v0  ;;  %489 = vmatpush.msra.mxu0 %v1507_v0  ;;  %v617_v38 = vstv %s449_s13  ;;  %s1332_s13 = sshra.s32 %s1121_s12, 4  ;;  %s1333_s13 = int_to_ptr.hbm [resolvable:$true] %s1332_s13 }
  0x23   : > { %1205 = vmatmul.msk.f32.vlgmr.msra.gmra.mxu2 %vm461_vm0, %v404_v1  ;;  %1204 = vmatmul.msk.f32.vlgmr.msra.gmra.mxu1 %vm461_vm0, %v403_v2  ;;  %v440_v1 = vld [vmem:[%s1806_s5] sm:$0xff]  ;;  %s1334_s0 = scalar_lea.hbm %s1333_s13, 8  ;;  %p1339_p3 = scmp.lt.s32.totalorder %s1333_s13, %s1812_s11 }
  0x24   : > { %1202 = vmatmul.msk.f32.vlgmr.msra.gmra.mxu0 %vm461_vm0, %v401_v3  ;;  %601 = vperm.xlu1 %1300, %v438_v12   ;;  %v413_v2 = vld [vmem:[%s1805_s4 + $0x20] sm:$0xff]  ;;  %p1335_p0 = scmp.ne.s32.totalorder %s1333_s13, %s1334_s0 }
  0x25   : > { %591 = vperm.xlu2 %1301, %v436_v19   ;;  %v442_v19 = vld [vmem:[%s1806_s5 + $0x10] sm:$0xff] }
  0x26   : > { %p1336_p1 = pnand %p1335_p0, %p1488_p5 }
  0x28   : > { %p1337_p2 = pneg %p1336_p1 }
  0x29   : > { %453 = vrot.lane.b32.xlu0 %v1507_v0, %s1388_s29 }
  0x2c   : > { %1203 = vmatmul.msk.f32.gmra.mxu0 %vm461_vm0, %v402_v4 }
  0x77   : > { %v597_v36 = vpop.permute.xlu2 %596 }
  0x7f   : > { %v592_v55 = vpop.permute.xlu2 %591 }
  0x8e   : > { %v607_v34 = vpop.permute.xlu1 %606 }
  0x93   : > { %v458_v9 = vpop.permute.xlu0 %457 }
  0x94   : > { %v460_v10 = vmul.f32 %v1538_v8, %v458_v9 }
  0x96   : > { %571 = vmatpush.msrb.mxu2 %v460_v10  ;;  %v602_v45 = vpop.permute.xlu1 %601  ;;  %v416_v10 = vld [vmem:[%s1805_s4 + $0x38] sm:$0xff] }
  0x97   : > { %1210 = vmatmul.msk.f32.vlgmr.msrb.gmra.mxu2 %vm461_vm0, %v405_v11 }
  0x9b   : > { %v454_v15 = vpop.permute.xlu0 %453 }
  0x9c   : > { %v456_v16 = vmul.f32 %v1551_v14, %v454_v15 }
  0x9e   : > { %530 = vmatpush.msrb.mxu1 %v456_v16 }
  0x9f   : > { %1206 = vmatmul.msk.f32.vlgmr.msrb.gmra.mxu1 %vm461_vm0, %v397_v17  ;;  %1211 = vmatmul.msk.f32.gmra.mxu2 %vm461_vm0, %v406_v18 }
  0xa0   : > { %v497_v26 = vpop.f32.mrf.mxu1 }
  0xa1   : > { %v491_v27 = vpop.f32.mrf.mxu0 }
  0xa6   : > { %v500_v25 = vpop.f32.mrf.mxu2 }
  0xa7   : > { %1207 = vmatmul.msk.f32.gmra.mxu1 %vm461_vm0, %v398_v20  ;;  %1212 = vmatmul.msk.f32.gmra.mxu2 %vm461_vm0, %v407_v21  ;;  %v409_v21 = vld [vmem:[%s1805_s4] sm:$0xff] }
  0xa9   : > { %v494_v30 = vpop.f32.mrf.mxu0 }
  0xaf   : > { %1208 = vmatmul.msk.f32.gmra.mxu1 %vm461_vm0, %v399_v22  ;;  %1213 = vmatmul.msk.f32.gmra.mxu2 %vm461_vm0, %v408_v23 }
  0xb7   : > { %1209 = vmatmul.msk.f32.gmra.mxu1 %vm461_vm0, %v400_v24 }
 0x11a   : > { %v573_v28 = vpop.f32.mrf.mxu2 }
 0x11c   : > { %v532_v29 = vpop.f32.mrf.mxu1 }
 0x11d   : > { %v533_v47 = vadd.f32 %v532_v29, %v491_v27  ;;  %v410_v27 = vld [vmem:[%s1805_s4 + $0x8] sm:$0xff]  ;;  %v411_v29 = vld [vmem:[%s1805_s4 + $0x10] sm:$0xff] }
 0x11f   : > { %v585_v53 = vadd.f32 %v573_v28, %v533_v47  ;;  %v418_v28 = vld [vmem:[%s1805_s4 + $0x48] sm:$0xff] }
 0x121   : > { %v609_v57 = vadd.f32 %v592_v55, %v585_v53 }
 0x122   : > { %v576_v31 = vpop.f32.mrf.mxu2 }
 0x123   : > { %v618_v60 = vmul.f32 %v617_v38, %v609_v57  ;;  %vm613_vm4 = vcmp.gt.f32.partialorder %v609_v57, 0.0 }
 0x124   : > { %v535_v32 = vpop.f32.mrf.mxu1 }
 0x125   : > { %v536_v33 = vadd.f32 %v535_v32, %v494_v30  ;;  %v622_v61 = vsel %vm613_vm4, %v609_v57, %v618_v60  ;;  %v419_v30 = vld [vmem:[%s1805_s4 + $0x50] sm:$0xff]  ;;  %v420_v32 = vld [vmem:[%s1805_s4 + $0x58] sm:$0xff] }
 0x127   : > { %v586_v35 = vadd.f32 %v576_v31, %v536_v33  ;;  %v412_v31 = vld [vmem:[%s1805_s4 + $0x18] sm:$0xff] }
 0x129   : > { %v610_v37 = vadd.f32 %v597_v36, %v586_v35 }
 0x12a   : > { %v579_v39 = vpop.f32.mrf.mxu2 }
 0x12b   : > { %vm614_vm1 = vcmp.gt.f32.partialorder %v610_v37, 0.0  ;;  %v619_v40 = vmul.f32 %v617_v38, %v610_v37 }
 0x12c   : > { %v538_v41 = vpop.f32.mrf.mxu1 }
 0x12d   : > { %v539_v42 = vadd.f32 %v538_v41, %v497_v26  ;;  %v623_v43 = vsel %vm614_vm1, %v610_v37, %v619_v40  ;;  %v417_v26 = vld [vmem:[%s1805_s4 + $0x40] sm:$0xff] }
 0x12e   : > { %628 = vrot.lane.b32.xlu0 %v623_v43, %s1388_s29 }
 0x12f   : > { %v587_v44 = vadd.f32 %v579_v39, %v539_v42 }
 0x131   : > { %v611_v46 = vadd.f32 %v602_v45, %v587_v44  ;;  %v806_v45 = vstv %s1200_s14  ;;  %s389_s14 = sand.u32 1, %s1376_s18  }
 0x132   : > { %v582_v50 = vpop.f32.mrf.mxu2  ;;  %s1106_s21 = scalar_lea.sflag [#allocation3], %s389_s14 }
 0x133   : > { %vm615_vm2 = vcmp.gt.f32.partialorder %v611_v46, 0.0  ;;  %v620_v48 = vmul.f32 %v617_v38, %v611_v46 }
 0x134   : > { %v541_v49 = vpop.f32.mrf.mxu1 }
 0x135   : > { %v542_v51 = vadd.f32 %v541_v49, %v500_v25  ;;  %v624_v52 = vsel %vm615_vm2, %v611_v46, %v620_v48 }
 0x136   : > { %630 = vrot.lane.b32.xlu1 %v624_v52, %s1388_s29 }
 0x137   : > { %v588_v54 = vadd.f32 %v582_v50, %v542_v51 }
 0x139   : > { %v612_v56 = vadd.f32 %v607_v34, %v588_v54 }
 0x13b   : > { %vm616_vm3 = vcmp.gt.f32.partialorder %v612_v56, 0.0  ;;  %v621_v58 = vmul.f32 %v617_v38, %v612_v56 }
 0x13d   : > { %v625_v59 = vsel %vm616_vm3, %v612_v56, %v621_v58 }
 0x13e   : > { %644 = vrot.lane.b32.xlu2 %v625_v59, %s1387_s25  ;;  %675 = vmatpush.msra.mxu3 %v625_v59 }
 0x13f   : > { %642 = vrot.lane.b32.xlu1 %v624_v52, %s1387_s25  ;;  %632 = vrot.lane.b32.xlu0 %v625_v59, %s1388_s29 }
 0x140   : > { %676 = vmatpush.msra.mxu3 %v624_v52 }
 0x142   : > { %677 = vmatpush.msra.mxu3 %v623_v43 }
 0x144   : > { %678 = vmatpush.msra.mxu3 %v622_v61 }
 0x145   : > { %1214 = vmatmul.msk.f32.vlgmr.msra.gmra.mxu3 %vm650_vm5, %v413_v2  ;;  %v447_v2 = vld [vmem:[%s1808_s7 + $0x18] sm:$0xff] }
 0x146   : > { %626 = vrot.lane.b32.xlu2 %v622_v61, %s1388_s29 }
 0x147   : > { %638 = vrot.lane.b32.xlu1 %v622_v61, %s1387_s25  ;;  %640 = vrot.lane.b32.xlu0 %v623_v43, %s1387_s25 }
 0x14d   : > { %1215 = vmatmul.msk.f32.gmra.mxu3 %vm650_vm5, %v414_v5 }
 0x14e   : > { %795 = vperm.xlu2 %1301, %v443_v62  }
 0x14f   : > { %785 = vperm.xlu1 %1300, %v441_v63   ;;  %790 = vperm.xlu0 %1302, %v442_v19  }
 0x155   : > { %1216 = vmatmul.msk.f32.gmra.mxu3 %vm650_vm5, %v415_v6 }
 0x156   : > { %780 = vperm.xlu2 %1301, %v440_v1  }
 0x15d   : > { %1217 = vmatmul.msk.f32.gmra.mxu3 %vm650_vm5, %v416_v10  ;;  %v445_v10 = vld [vmem:[%s1808_s7 + $0x8] sm:$0xff] }
 0x198   : > { %v645_v3 = vpop.permute.xlu2 %644 }
 0x199   : > { %v649_v4 = vmul.f32 %v645_v3, %v1538_v8 }
 0x19b   : > { %757 = vmatpush.msra.mxu1 %v649_v4 }
 0x1a0   : > { %v629_v9 = vpop.permute.xlu0 %628  ;;  %v627_v17 = vpop.permute.xlu2 %626 }
 0x1a1   : > { %v635_v18 = vmul.f32 %v629_v9, %v1551_v14  ;;  %v634_v20 = vmul.f32 %v627_v17, %v1551_v14 }
 0x1a8   : > { %v631_v7 = vpop.permute.xlu1 %630  ;;  %v796_v53 = vpop.permute.xlu2 %795 }
 0x1a9   : > { %v636_v16 = vmul.f32 %v631_v7, %v1551_v14  ;;  %v444_v7 = vld [vmem:[%s1808_s7] sm:$0xff] }
 0x1b0   : > { %v781_v1 = vpop.permute.xlu2 %780 }
 0x1b1   : > { %v643_v11 = vpop.permute.xlu1 %642  ;;  %v633_v12 = vpop.permute.xlu0 %632 }
 0x1b2   : > { %v648_v13 = vmul.f32 %v643_v11, %v1538_v8  ;;  %v637_v15 = vmul.f32 %v633_v12, %v1551_v14  ;;  %v446_v11 = vld [vmem:[%s1808_s7 + $0x10] sm:$0xff] }
 0x1b4   : > { %716 = vmatpush.msrb.mxu0 %v637_v15  ;;  %758 = vmatpush.msra.mxu1 %v648_v13 }
 0x1b6   : > { %717 = vmatpush.msrb.mxu0 %v636_v16  ;;  %v425_v16 = vld [vmem:[%s1807_s6 + $0x20] sm:$0xff] }
 0x1b8   : > { %718 = vmatpush.msrb.mxu0 %v635_v18  ;;  %v426_v18 = vld [vmem:[%s1807_s6 + $0x28] sm:$0xff] }
 0x1b9   : > { %v639_v22 = vpop.permute.xlu1 %638  ;;  %v641_v23 = vpop.permute.xlu0 %640 }
 0x1ba   : > { %v647_v24 = vmul.f32 %v641_v23, %v1538_v8  ;;  %719 = vmatpush.msrb.mxu0 %v634_v20  ;;  %v646_v25 = vmul.f32 %v639_v22, %v1538_v8 }
 0x1bb   : > { %1218 = vmatmul.msk.f32.vlgmr.msrb.gmra.mxu0 %vm650_vm5, %v409_v21  ;;  %v427_v21 = vld [vmem:[%s1807_s6 + $0x30] sm:$0xff] }
 0x1bc   : > { %759 = vmatpush.msra.mxu1 %v647_v24 }
 0x1be   : > { %760 = vmatpush.msra.mxu1 %v646_v25  ;;  %v428_v25 = vld [vmem:[%s1807_s6 + $0x38] sm:$0xff] }
 0x1bf   : > { %1222 = vmatmul.msk.f32.vlgmr.msra.gmra.mxu1 %vm650_vm5, %v417_v26 }
 0x1c1   : > { %v786_v42 = vpop.permute.xlu1 %785  ;;  %v791_v50 = vpop.permute.xlu0 %790 }
 0x1c3   : > { %1219 = vmatmul.msk.f32.gmra.mxu0 %vm650_vm5, %v410_v27 }
 0x1c7   : > { %1223 = vmatmul.msk.f32.gmra.mxu1 %vm650_vm5, %v418_v28 }
 0x1c8   : > { %v680_v33 = vpop.f32.mrf.mxu3 }
 0x1cb   : > { %1220 = vmatmul.msk.f32.gmra.mxu0 %vm650_vm5, %v411_v29  ;;  %v421_v29 = vld [vmem:[%s1807_s6] sm:$0xff] }
 0x1cf   : > { %1224 = vmatmul.msk.f32.gmra.mxu1 %vm650_vm5, %v419_v30 }
 0x1d0   : > { %v683_v35 = vpop.f32.mrf.mxu3 }
 0x1d3   : > { %1221 = vmatmul.msk.f32.gmra.mxu0 %vm650_vm5, %v412_v31 }
 0x1d7   : > { %1225 = vmatmul.msk.f32.gmra.mxu1 %vm650_vm5, %v420_v32 }
 0x1d8   : > { %v686_v40 = vpop.f32.mrf.mxu3 }
 0x1e0   : > { %v689_v52 = vpop.f32.mrf.mxu3 }
 0x238   : > { %v721_v34 = vpop.f32.mrf.mxu0 }
 0x239   : > { %v722_v58 = vadd.f32 %v721_v34, %v680_v33  ;;  %v422_v33 = vld [vmem:[%s1807_s6 + $0x8] sm:$0xff] }
 0x23c   : > { %v762_v36 = vpop.f32.mrf.mxu1 }
 0x23d   : > { %v774_v62 = vadd.f32 %v762_v36, %v722_v58  ;;  %v423_v36 = vld [vmem:[%s1807_s6 + $0x10] sm:$0xff] }
 0x23f   : > { %v798_v4 = vadd.f32 %v781_v1, %v774_v62 }
 0x240   : > { %v724_v37 = vpop.f32.mrf.mxu0 }
 0x241   : > { %v725_v38 = vadd.f32 %v724_v37, %v683_v35  ;;  %v807_v6 = vmul.f32 %v806_v45, %v798_v4  ;;  %vm802_vm9 = vcmp.gt.f32.partialorder %v798_v4, 0.0  ;;  %v429_v35 = vld [vmem:[%s1807_s6 + $0x40] sm:$0xff]  ;;  %v430_v37 = vld [vmem:[%s1807_s6 + $0x48] sm:$0xff] }
 0x243   : > { %v811_v9 = vsel %vm802_vm9, %v798_v4, %v807_v6 }
 0x244   : > { %v765_v39 = vpop.f32.mrf.mxu1 }
 0x245   : > { %v775_v41 = vadd.f32 %v765_v39, %v725_v38  ;;  %v424_v38 = vld [vmem:[%s1807_s6 + $0x18] sm:$0xff]  ;;  %v431_v39 = vld [vmem:[%s1807_s6 + $0x50] sm:$0xff] }
 0x247   : > { %v799_v43 = vadd.f32 %v786_v42, %v775_v41 }
 0x248   : > { %v727_v44 = vpop.f32.mrf.mxu0 }
 0x249   : > { %v728_v46 = vadd.f32 %v727_v44, %v686_v40  ;;  %vm803_vm6 = vcmp.gt.f32.partialorder %v799_v43, 0.0  ;;  %v808_v47 = vmul.f32 %v806_v45, %v799_v43  ;;  %v432_v40 = vld [vmem:[%s1807_s6 + $0x58] sm:$0xff] }
 0x24b   : > { %v812_v48 = vsel %vm803_vm6, %v799_v43, %v808_v47 }
 0x24c   : > { %v768_v49 = vpop.f32.mrf.mxu1  ;;  %817 = vrot.lane.b32.xlu0 %v812_v48, %s1388_s29 }
 0x24d   : > { %v776_v51 = vadd.f32 %v768_v49, %v728_v46 }
 0x24f   : > { %v800_v54 = vadd.f32 %v791_v50, %v776_v51 }
 0x250   : > { %v730_v55 = vpop.f32.mrf.mxu0 }
 0x251   : > { %v809_v56 = vmul.f32 %v806_v45, %v800_v54  ;;  %v731_v57 = vadd.f32 %v730_v55, %v689_v52  ;;  %vm804_vm7 = vcmp.gt.f32.partialorder %v800_v54, 0.0 }
 0x253   : > { %v813_v59 = vsel %vm804_vm7, %v800_v54, %v809_v56 }
 0x254   : > { %v771_v60 = vpop.f32.mrf.mxu1  ;;  %831 = vrot.lane.b32.xlu0 %v813_v59, %s1387_s25  ;;  %819 = vrot.lane.b32.xlu2 %v813_v59, %s1388_s29 }
 0x255   : > { %v777_v61 = vadd.f32 %v771_v60, %v731_v57 }
 0x257   : > { %v801_v63 = vadd.f32 %v796_v53, %v777_v61  ;;  %v994_v53 = vstv %s1201_s15  ;;  %s1198_s15 = sshll.u32 %s389_s14, 3 }
 0x259   : > { %vm805_vm8 = vcmp.gt.f32.partialorder %v801_v63, 0.0  ;;  %v810_v3 = vmul.f32 %v806_v45, %v801_v63 }
 0x25b   : > { %v814_v5 = vsel %vm805_vm8, %v801_v63, %v810_v3 }
 0x25c   : > { %983 = vperm.xlu0 %1302, %v447_v2   ;;  %833 = vrot.lane.b32.xlu2 %v814_v5, %s1387_s25 }
 0x25d   : > { %821 = vrot.lane.b32.xlu1 %v814_v5, %s1388_s29  ;;  %863 = vmatpush.msra.mxu2 %v814_v5 }
 0x25f   : > { %864 = vmatpush.msra.mxu2 %v813_v59 }
 0x261   : > { %865 = vmatpush.msra.mxu2 %v812_v48 }
 0x263   : > { %866 = vmatpush.msra.mxu2 %v811_v9 }
 0x264   : > { %968 = vperm.xlu0 %1302, %v444_v7   ;;  %827 = vrot.lane.b32.xlu2 %v811_v9, %s1387_s25 }
 0x265   : > { %815 = vrot.lane.b32.xlu1 %v811_v9, %s1388_s29  ;;  %1226 = vmatmul.msk.f32.vlgmr.msra.gmra.mxu2 %vm650_vm5, %v425_v16 }
 0x26c   : > { %973 = vperm.xlu2 %1301, %v445_v10  }
 0x26d   : > { %829 = vrot.lane.b32.xlu1 %v812_v48, %s1387_s25  ;;  %1227 = vmatmul.msk.f32.gmra.mxu2 %vm650_vm5, %v426_v18  ;;  %v434_v18 = vld [vmem:[%s1809_s8 + $0x8] sm:$0xff] }
 0x275   : > { %978 = vperm.xlu1 %1300, %v446_v11   ;;  %1228 = vmatmul.msk.f32.gmra.mxu2 %vm650_vm5, %v427_v21 }
 0x27d   : > { %1229 = vmatmul.msk.f32.gmra.mxu2 %vm650_vm5, %v428_v25 }
 0x2ae   : > { %v820_v12 = vpop.permute.xlu2 %819 }
 0x2af   : > { %v825_v24 = vmul.f32 %v820_v12, %v1551_v14 }
 0x2b6   : > { %v834_v13 = vpop.permute.xlu2 %833 }
 0x2b7   : > { %v838_v15 = vmul.f32 %v834_v13, %v1538_v8 }
 0x2b9   : > { %945 = vmatpush.msra.mxu0 %v838_v15 }
 0x2be   : > { %v818_v17 = vpop.permute.xlu0 %817  ;;  %v828_v30 = vpop.permute.xlu2 %827 }
 0x2bf   : > { %v824_v26 = vmul.f32 %v818_v17, %v1551_v14  ;;  %v835_v34 = vmul.f32 %v828_v30, %v1538_v8  ;;  %v448_v17 = vld [vmem:[%s1810_s9] sm:$0xff] }
 0x2c6   : > { %v832_v19 = vpop.permute.xlu0 %831  ;;  %v974_v50 = vpop.permute.xlu2 %973 }
 0x2c7   : > { %v837_v20 = vmul.f32 %v832_v19, %v1538_v8 }
 0x2c9   : > { %946 = vmatpush.msra.mxu0 %v837_v20 }
 0x2ce   : > { %v984_v61 = vpop.permute.xlu0 %983 }
 0x2cf   : > { %v822_v22 = vpop.permute.xlu1 %821 }
 0x2d0   : > { %v826_v23 = vmul.f32 %v822_v22, %v1551_v14 }
 0x2d2   : > { %904 = vmatpush.msrb.mxu3 %v826_v23 }
 0x2d4   : > { %905 = vmatpush.msrb.mxu3 %v825_v24 }
 0x2d6   : > { %906 = vmatpush.msrb.mxu3 %v824_v26  ;;  %v969_v10 = vpop.permute.xlu0 %968 }
 0x2d7   : > { %v816_v27 = vpop.permute.xlu1 %815 }
 0x2d8   : > { %v823_v28 = vmul.f32 %v816_v27, %v1551_v14 }
 0x2da   : > { %907 = vmatpush.msrb.mxu3 %v823_v28 }
 0x2db   : > { %1230 = vmatmul.msk.f32.vlgmr.msrb.gmra.mxu3 %vm650_vm5, %v421_v29 }
 0x2df   : > { %v830_v31 = vpop.permute.xlu1 %829 }
 0x2e0   : > { %v836_v32 = vmul.f32 %v830_v31, %v1538_v8 }
 0x2e2   : > { %947 = vmatpush.msra.mxu0 %v836_v32 }
 0x2e3   : > { %1231 = vmatmul.msk.f32.gmra.mxu3 %vm650_vm5, %v422_v33  ;;  %v433_v33 = vld [vmem:[%s1809_s8] sm:$0xff] }
 0x2e4   : > { %948 = vmatpush.msra.mxu0 %v835_v34 }
 0x2e5   : > { %1234 = vmatmul.msk.f32.vlgmr.msra.gmra.mxu0 %vm650_vm5, %v429_v35 }
 0x2e7   : > { %v979_v59 = vpop.permute.xlu1 %978 }
 0x2e8   : > { %v868_v41 = vpop.f32.mrf.mxu2 }
 0x2eb   : > { %1232 = vmatmul.msk.f32.gmra.mxu3 %vm650_vm5, %v423_v36  ;;  %v435_v36 = vld [vmem:[%s1809_s8 + $0x10] sm:$0xff] }
 0x2ed   : > { %1235 = vmatmul.msk.f32.gmra.mxu0 %vm650_vm5, %v430_v37 }
 0x2f0   : > { %v871_v43 = vpop.f32.mrf.mxu2 }
 0x2f3   : > { %1233 = vmatmul.msk.f32.gmra.mxu3 %vm650_vm5, %v424_v38 }
 0x2f5   : > { %1236 = vmatmul.msk.f32.gmra.mxu0 %vm650_vm5, %v431_v39 }
 0x2f8   : > { %v874_v48 = vpop.f32.mrf.mxu2 }
 0x2fd   : > { %1237 = vmatmul.msk.f32.gmra.mxu0 %vm650_vm5, %v432_v40 }
 0x300   : > { %v877_v60 = vpop.f32.mrf.mxu2 }
 0x35e   : > { %v909_v42 = vpop.f32.mrf.mxu3 }
 0x35f   : > { %v910_v3 = vadd.f32 %v909_v42, %v868_v41 }
 0x362   : > { %v950_v44 = vpop.f32.mrf.mxu0 }
 0x363   : > { %v962_v7 = vadd.f32 %v950_v44, %v910_v3 }
 0x365   : > { %v986_v12 = vadd.f32 %v969_v10, %v962_v7 }
 0x366   : > { %v912_v45 = vpop.f32.mrf.mxu3 }
 0x367   : > { %v913_v46 = vadd.f32 %v912_v45, %v871_v43  ;;  %v995_v15 = vmul.f32 %v994_v53, %v986_v12  ;;  %vm990_vm13 = vcmp.gt.f32.partialorder %v986_v12, 0.0 }
 0x369   : > { %v999_v16 = vsel %vm990_vm13, %v986_v12, %v995_v15 }
 0x36a   : > { %v953_v47 = vpop.f32.mrf.mxu0 }
 0x36b   : > { %v963_v49 = vadd.f32 %v953_v47, %v913_v46 }
 0x36d   : > { %v987_v51 = vadd.f32 %v974_v50, %v963_v49 }
 0x36e   : > { %v915_v52 = vpop.f32.mrf.mxu3 }
 0x36f   : > { %v916_v54 = vadd.f32 %v915_v52, %v874_v48  ;;  %vm991_vm10 = vcmp.gt.f32.partialorder %v987_v51, 0.0  ;;  %v996_v55 = vmul.f32 %v994_v53, %v987_v51 }
 0x371   : > { %v1000_v56 = vsel %vm991_vm10, %v987_v51, %v996_v55 }
 0x372   : > { %v956_v57 = vpop.f32.mrf.mxu0  ;;  %1005 = vrot.lane.b32.xlu1 %v1000_v56, %s1388_s29 }
 0x373   : > { %v964_v58 = vadd.f32 %v956_v57, %v916_v54 }
 0x375   : > { %v988_v62 = vadd.f32 %v979_v59, %v964_v58 }
 0x376   : > { %v918_v63 = vpop.f32.mrf.mxu3 }
 0x377   : > { %v919_v1 = vadd.f32 %v918_v63, %v877_v60  ;;  %vm992_vm11 = vcmp.gt.f32.partialorder %v988_v62, 0.0  ;;  %v997_v2 = vmul.f32 %v994_v53, %v988_v62 }
 0x379   : > { %v1001_v4 = vsel %vm992_vm11, %v988_v62, %v997_v2 }
 0x37a   : > { %v959_v5 = vpop.f32.mrf.mxu0  ;;  %1007 = vrot.lane.b32.xlu2 %v1001_v4, %s1388_s29 }
 0x37b   : > { %v965_v6 = vadd.f32 %v959_v5, %v919_v1 }
 0x37d   : > { %v989_v9 = vadd.f32 %v984_v61, %v965_v6 }
 0x37f   : > { %vm993_vm12 = vcmp.gt.f32.partialorder %v989_v9, 0.0  ;;  %v998_v11 = vmul.f32 %v994_v53, %v989_v9 }
 0x381   : > { %v1002_v13 = vsel %vm993_vm12, %v989_v9, %v998_v11 }
 0x382   : > { %1019 = vrot.lane.b32.xlu2 %v1001_v4, %s1387_s25  ;;  %1021 = vrot.lane.b32.xlu0 %v1002_v13, %s1387_s25 }
 0x383   : > { %1009 = vrot.lane.b32.xlu1 %v1002_v13, %s1388_s29  ;;  %1042 = vmatpush.msrb.mxu1 %v1002_v13 }
 0x385   : > { %1043 = vmatpush.msrb.mxu1 %v1001_v4 }
 0x387   : > { %1044 = vmatpush.msrb.mxu1 %v1000_v56 }
 0x389   : > { %1045 = vmatpush.msrb.mxu1 %v999_v16 }
 0x38a   : > { %1015 = vrot.lane.b32.xlu2 %v999_v16, %s1387_s25  ;;  %1003 = vrot.lane.b32.xlu0 %v999_v16, %s1388_s29 }
 0x38b   : > { %1017 = vrot.lane.b32.xlu1 %v1000_v56, %s1387_s25  ;;  %1238 = vmatmul.msk.f32.vlgmr.msrb.gmra.mxu1 %vm650_vm5, %v434_v18  ;;  %s391_s25 = scalar_lea.vmem [#allocation5], %s1198_s15  ;;  %s1338_s15 = scalar_lea.hbm %s1812_s11, 32 }
 0x38c   : > { %s1118_s29 = sshll.u32 %s391_s25, 4  ;;  %p1340_p4 = scmp.lt.s32.totalorder %s1338_s15, %s1334_s0  ;;  %s1119_s29 = int_to_ptr.vmem [resolvable:$true] %s1118_s29 }
 0x38e   : > { %p1341_p7 = por %p1340_p4, %p1339_p3 }
 0x390   : > { %p1342_p8 = pnand %p1341_p7, %p1337_p2 }
 0x392   : > { %1099 = vperm.xlu0 %1302, %v448_v17  }
 0x3d4   : > { %v1008_v19 = vpop.permute.xlu2 %1007 }
 0x3d5   : > { %v1013_v27 = vmul.f32 %v1008_v19, %v1551_v14 }
 0x3dc   : > { %v1020_v21 = vpop.permute.xlu2 %1019 }
 0x3dd   : > { %v1025_v26 = vmul.f32 %v1020_v21, %v1538_v8 }
 0x3e4   : > { %v1006_v20 = vpop.permute.xlu1 %1005  ;;  %v1016_v30 = vpop.permute.xlu2 %1015 }
 0x3e5   : > { %v1012_v28 = vmul.f32 %v1006_v20, %v1551_v14  ;;  %v1023_v35 = vmul.f32 %v1016_v30, %v1538_v8 }
 0x3f4   : > { %v1022_v22 = vpop.permute.xlu0 %1021 }
 0x3f5   : > { %v1026_v23 = vmul.f32 %v1022_v22, %v1538_v8  ;;  %v1010_v24 = vpop.permute.xlu1 %1009 }
 0x3f6   : > { %v1014_v25 = vmul.f32 %v1010_v24, %v1551_v14 }
 0x3f7   : > { %1088 = vmatpush.msra.mxu3 %v1026_v23 }
 0x3f8   : > { %1065 = vmatpush.msrb.mxu2 %v1014_v25 }
 0x3f9   : > { %1089 = vmatpush.msra.mxu3 %v1025_v26 }
 0x3fa   : > { %1066 = vmatpush.msrb.mxu2 %v1013_v27 }
 0x3fc   : > { %1067 = vmatpush.msrb.mxu2 %v1012_v28  ;;  %v1004_v29 = vpop.permute.xlu0 %1003 }
 0x3fd   : > { %v1011_v31 = vmul.f32 %v1004_v29, %v1551_v14  ;;  %v1018_v32 = vpop.permute.xlu1 %1017 }
 0x3fe   : > { %v1024_v34 = vmul.f32 %v1018_v32, %v1538_v8 }
 0x3ff   : > { %1068 = vmatpush.msrb.mxu2 %v1011_v31 }
 0x400   : > { %1090 = vmatpush.msra.mxu3 %v1024_v34  ;;  %1239 = vmatmul.msk.f32.vlgmr.msrb.gmra.mxu2 %vm650_vm5, %v433_v33 }
 0x402   : > { %1091 = vmatpush.msra.mxu3 %v1023_v35 }
 0x403   : > { %1240 = vmatmul.msk.f32.vlgmr.msra.gmra.mxu3 %vm650_vm5, %v435_v36 }
 0x404   : > { %v1100_v40 = vpop.permute.xlu0 %1099 }
 0x408   : > { %v1047_v14 = vpop.f32.mrf.mxu1 }
 0x483   : > { %v1070_v37 = vpop.f32.mrf.mxu2 }
 0x484   : > { %v1071_v38 = vadd.f32 %v1070_v37, %v1047_v14 }
 0x486   : > { %v1093_v8 = vpop.f32.mrf.mxu3 }
 0x487   : > { %v1096_v39 = vadd.f32 %v1093_v8, %v1071_v38 }
 0x489   : > { %v1102_v41 = vadd.f32 %v1100_v40, %v1096_v39 }
 0x48b   : > { %v1103_v42 = vadd.f32 %v1102_v41, %v1507_v0 }
 0x48d   : > { %1104 = vst [vmem:[%s391_s25] sm:$0xff] %v1103_v42 }
 0x48e   : > { %1345 = shalt.err (!%p1342_p8)
}
 0x48f   : > { %1251 = dma.vmem_to_hbm [thread:$0]  (%p1488_p5), %s1119_s29, 128, %s1121_s12, %s1106_s21  }
 0x490 PF: > { %p1263_p9 = scmp.ge.s32.totalorder %s1384_s20, 2  ;;  %s1132_s14 = sand.u32 1, %s1372_s17  }
 0x491   : > { %s1133_s25 = scalar_lea.sflag [#allocation3], %s1132_s14 }
 0x492   : > { %p1258_p10 = pnand %p1263_p9, %p1492_p6 }
 0x494   : > { %p1259_p11 = pneg %p1258_p10 }
 0x496   : > { %1367 = dma.done.wait (%p1259_p11), %s1133_s25, 128  }
 0x497   : > { %1369 = vsyncadd (%p1259_p11), %s1133_s25, 4294967168  ;;  %p22_p12 = scmp.ge.s32.totalorder %s1475_s23, 6   ;;  %s1817_s17 = smov %s1376_s18 }
 0x498   : > { %s1818_s18 = smov %s1380_s19  ;;  %s1819_s19 = smov %s1486_s26 }
 0x499   : > { %s1820_s20 = smov %s1475_s23  ;;  %24 = sbr.rel (!%p22_p12) target bundleno = 6 (0x6), region = 104 }
 0x49e   :  { %1139 = vsyncpa [#allocation3], 1 }
 0x49f   :  { %1141 = vsyncpa [#allocation3 + $0x1], 1 }
 0x4a0   :  { %1142 = vsyncpa [#allocation4], 1 }
 0x4a1   :  { %1144 = vsyncpa [#allocation4 + $0x1], 1 }

</bundles_post_ra>
